<compile_context>
chip_gen: v5e
topology: v5e:2x2
jax: 0.10.0
libtpu: 0.0.40
codegen_flags: <defaults>
</compile_context>

<pallas_src>
import jax
import jax.numpy as jnp
from jax.experimental import pallas as pl
from jax.experimental.pallas import tpu as pltpu

_LANE = 128
# Per-lane resident VMEM (f32): x 2x-buffered (24) + out 2x-buffered (8) + h1 (256) + h2 (128).
_PER_LANE_BYTES = 416
_WEIGHT_BYTES = (64 * 3 + 64 + 32 * 64 + 32 + 32 + 1) * 4  # ~9.3 KiB, resident once


def mlp_kernel(x_ref, w1_ref, b1_ref, w2_ref, b2_ref, w3_ref, b3_ref, o_ref):
    # Whole forward pass fused for one lane-major batch tile.
    xt = x_ref[...]                                                     # (3, bt)  f32
    w1 = w1_ref[...]                                                    # (64, 3)

    # --- fc1 + ReLU on the VPU (K=3 is too shallow for the MXU) ---
    h1 = (w1[:, 0:1] * xt[0:1, :]
          + w1[:, 1:2] * xt[1:2, :]
          + w1[:, 2:3] * xt[2:3, :])                                    # (64, bt)
    h1 = jnp.maximum(h1 + b1_ref[...], 0.0)

    # --- fc2 + ReLU on the MXU ---
    h2 = jnp.dot(w2_ref[...], h1,
                 preferred_element_type=jnp.float32,
                 precision=jax.lax.Precision.HIGHEST)                   # (32, bt)
    h2 = jnp.maximum(h2 + b2_ref[...], 0.0)

    # --- fc3 + Sigmoid (M=1 matmul is tiny; sigmoid's exp goes to the EUP slot) ---
    z = jnp.dot(w3_ref[...], h2,
                preferred_element_type=jnp.float32,
                precision=jax.lax.Precision.HIGHEST)                    # (1, bt)
    o_ref[...] = jax.nn.sigmoid(z + b3_ref[...])


def _tpu_vmem_capacity():
    """Physical per-core VMEM in bytes; conservative fallback if the query is unavailable."""
    try:
        return int(pltpu.get_tpu_info().vmem_capacity_bytes)
    except Exception:
        return 64 << 20  # v7x is the smallest of the three generations


def _num_tensorcores():
    """TensorCores per chip (2 on v7x, 1 on v5e/v6e); defaults to 1 if unknown."""
    try:
        info = pltpu.get_tpu_info()
        for name in ("num_tensorcores", "tensorcores_per_chip", "num_cores_per_chip"):
            v = getattr(info, name, None)
            if v:
                return min(int(v), 2)
    except Exception:
        pass
    return 1


def _choose_tile(B, batch_tile, vmem_cap, num_tc):
    """Pick a lane-aligned batch tile and the padded batch size (generation-aware)."""
    b_pad_min = pl.cdiv(B, _LANE) * _LANE
    # Keep the per-step resident footprint well under scoped VMEM, leaving headroom for
    # Mosaic internal scratch and the double-buffered streams.
    budget = int(vmem_cap * 0.45)
    bt_cap = max(_LANE, (budget // _PER_LANE_BYTES) // _LANE * _LANE)
    bt = max(_LANE, (min(batch_tile, bt_cap, b_pad_min) // _LANE) * _LANE)
    # Megacore split: only when the part actually has 2 TensorCores AND the batch is large
    # enough that both cores get meaningful work.  Never split on single-TC v5e/v6e.
    if num_tc >= 2 and b_pad_min >= 4096 and b_pad_min // bt < 2:
        bt = max(_LANE, (b_pad_min // 2 // _LANE) * _LANE)
    B_pad = pl.cdiv(b_pad_min, bt) * bt
    return bt, B_pad


def simple_nn_forward(x, params, *, batch_tile=32768, features_major=False):
    """Fused SimpleNN forward.

    x: (B, 3) float32 torch layout, or (3, B) if features_major=True.
    params: PyTorch-style weights: w1 (64,3), b1 (64,1); w2 (32,64), b2 (32,1);
            w3 (1,32), b3 (1,1).
    Returns (B, 1) float32, matching SimpleNN.forward.  Call this under jax.jit so the
    transpose/pad fuses with the rest of the program.
    """
    if features_major:
        Fin, B = x.shape
        xT = x
    else:
        B, Fin = x.shape
        xT = x.T                                          # (3, B); fused by XLA under jit
    assert Fin == 3
    w1, b1 = params["w1"], params["b1"]
    w2, b2 = params["w2"], params["b2"]
    w3, b3 = params["w3"], params["b3"]

    vmem_cap = _tpu_vmem_capacity()
    num_tc = _num_tensorcores()
    bt, B_pad = _choose_tile(B, batch_tile, vmem_cap, num_tc)

    if B_pad != B:
        xT = jnp.pad(xT, ((0, 0), (0, B_pad - B)))        # (3, B_pad)

    grid = (B_pad // bt,)

    # Raise the scoped-VMEM limit to cover the resident footprint (v5e default is ~16 MiB),
    # while keeping headroom below physical VMEM (critical on v7x's 64 MiB).
    resident = _PER_LANE_BYTES * bt + _WEIGHT_BYTES
    vmem_limit = min(vmem_cap - (8 << 20), max(32 << 20, resident + (8 << 20)))

    # Weights/biases: full-array blocks with constant index maps -> fetched once, resident.
    def full(arr):
        return pl.BlockSpec(arr.shape, lambda i: (0, 0))

    flops = 2 * B_pad * (3 * 64 + 64 * 32 + 32 * 1)
    bytes_accessed = (3 * B_pad + B_pad) * 4 + _WEIGHT_BYTES  # kernel-side HBM traffic only

    out = pl.pallas_call(
        mlp_kernel,
        out_shape=jax.ShapeDtypeStruct((1, B_pad), jnp.float32),
        grid_spec=pltpu.PrefetchScalarGridSpec(
            num_scalar_prefetch=0,
            grid=grid,
            in_specs=[
                pl.BlockSpec((3, bt), lambda i: (0, i)),   # x tile: batch on lanes
                full(w1), full(b1),
                full(w2), full(b2),
                full(w3), full(b3),
            ],
            out_specs=pl.BlockSpec((1, bt), lambda i: (0, i)),  # lane-dense output slab
        ),
        compiler_params=pltpu.CompilerParams(
            dimension_semantics=("parallel",),
            vmem_limit_bytes=int(vmem_limit),
        ),
        cost_estimate=pl.CostEstimate(
            flops=flops,
            transcendentals=B_pad,          # one exp per sigmoid output
            bytes_accessed=bytes_accessed,
        ),
    )(xT, w1, b1, w2, b2, w3, b3)

    # (1, B_pad) -> (B, 1): drop padding.  (The slice of the padded slab is a small copy,
    # negligible vs. the kernel's own traffic.)
    return out[0, :B].reshape(B, 1)


def init_params(key):
    """Deterministic init matching nn.Linear defaults (uniform +/- 1/sqrt(fan_in)).

    Weights are stored PyTorch-style (out, in); biases as (out, 1) columns so they broadcast
    over the lane (batch) axis inside the kernel.
    """
    ks = jax.random.split(key, 6)

    def linear(kw, kb, fan_in, fan_out):
        bound = 1.0 / jnp.sqrt(jnp.float32(fan_in))
        w = jax.random.uniform(kw, (fan_out, fan_in), jnp.float32, -bound, bound)
        b = jax.random.uniform(kb, (fan_out, 1), jnp.float32, -bound, bound)
        return w, b

    w1, b1 = linear(ks[0], ks[1], 3, 64)
    w2, b2 = linear(ks[2], ks[3], 64, 32)
    w3, b3 = linear(ks[4], ks[5], 32, 1)
    return {"w1": w1, "b1": b1, "w2": w2, "b2": b2, "w3": w3, "b3": b3}


def reference_forward(x, p):
    h1 = jnp.maximum(x @ p["w1"].T + p["b1"][:, 0], 0.0)
    h2 = jnp.maximum(h1 @ p["w2"].T + p["b2"][:, 0], 0.0)
    return jax.nn.sigmoid(h2 @ p["w3"].T + p["b3"][:, 0])


if __name__ == "__main__":
    key = jax.random.PRNGKey(0)
    kx, kp = jax.random.split(key)

    params = init_params(kp)

    # jit the whole forward so the transpose/pad fuse with the call (single dispatch).
    fwd = jax.jit(simple_nn_forward)

    B = 256  # small test batch; single lane-aligned grid step on single-TC parts
    x = jax.random.normal(kx, (B, 3), dtype=jnp.float32)
    out = jax.block_until_ready(fwd(x, params))

    ref = reference_forward(x, params)
    assert out.shape == (B, 1)
    assert jnp.allclose(out, ref, atol=1e-5, rtol=1e-5), "mismatch vs pure-JAX reference"

    # Also exercise a non-128-multiple batch (padding path).
    B2 = 50
    x2 = jax.random.normal(kx, (B2, 3), dtype=jnp.float32)
    out2 = jax.block_until_ready(fwd(x2, params))
    assert out2.shape == (B2, 1)
    assert jnp.allclose(out2, reference_forward(x2, params), atol=1e-5, rtol=1e-5)

    print("KERNEL_OK")
</pallas_src>

<mosaic_0001>
module attributes {stable_mosaic.version = 11 : i64} {
  func.func @mlp_kernel(%arg0: i32, %arg1: memref<3x256xf32, #tpu.memory_space<vmem>>, %arg2: memref<64x3xf32, #tpu.memory_space<vmem>>, %arg3: memref<64x1xf32, #tpu.memory_space<vmem>>, %arg4: memref<32x64xf32, #tpu.memory_space<vmem>>, %arg5: memref<32x1xf32, #tpu.memory_space<vmem>>, %arg6: memref<1x32xf32, #tpu.memory_space<vmem>>, %arg7: memref<1x1xf32, #tpu.memory_space<vmem>>, %arg8: memref<1x256xf32, #tpu.memory_space<vmem>>) attributes {dimension_semantics = [#tpu.dimension_semantics<parallel>], iteration_bounds = array<i64: 1>, scalar_prefetch = 0 : i64, scratch_operands = 0 : i64, tpu.core_type = #tpu.core_type<tc>, window_params = [{transform_indices = @transform_0, window_bounds = array<i64: 3, 256>}, {pipeline_mode = #tpu.pipeline_mode<synchronous>, transform_indices = @transform_1, window_bounds = array<i64: 64, 3>}, {pipeline_mode = #tpu.pipeline_mode<synchronous>, transform_indices = @transform_2, window_bounds = array<i64: 64, 1>}, {pipeline_mode = #tpu.pipeline_mode<synchronous>, transform_indices = @transform_3, window_bounds = array<i64: 32, 64>}, {pipeline_mode = #tpu.pipeline_mode<synchronous>, transform_indices = @transform_4, window_bounds = array<i64: 32, 1>}, {pipeline_mode = #tpu.pipeline_mode<synchronous>, transform_indices = @transform_5, window_bounds = array<i64: 1, 32>}, {pipeline_mode = #tpu.pipeline_mode<synchronous>, transform_indices = @transform_6, window_bounds = array<i64: 1, 1>}, {transform_indices = @transform_7, window_bounds = array<i64: 1, 256>}]} {
    %c0 = arith.constant 0 : index
    %c0_0 = arith.constant 0 : index
    %0 = vector.load %arg1[%c0, %c0_0] : memref<3x256xf32, #tpu.memory_space<vmem>>, vector<3x256xf32>
    %c0_1 = arith.constant 0 : index
    %c0_2 = arith.constant 0 : index
    %1 = vector.load %arg2[%c0_1, %c0_2] : memref<64x3xf32, #tpu.memory_space<vmem>>, vector<64x3xf32>
    %2 = vector.extract_strided_slice %1 {offsets = [0, 0], sizes = [64, 1], strides = [1, 1]} : vector<64x3xf32> to vector<64x1xf32>
    %3 = vector.extract_strided_slice %0 {offsets = [0, 0], sizes = [1, 256], strides = [1, 1]} : vector<3x256xf32> to vector<1x256xf32>
    %4 = vector.broadcast %2 : vector<64x1xf32> to vector<64x256xf32>
    %5 = vector.broadcast %3 : vector<1x256xf32> to vector<64x256xf32>
    %6 = arith.mulf %4, %5 : vector<64x256xf32>
    %7 = vector.extract_strided_slice %1 {offsets = [0, 1], sizes = [64, 1], strides = [1, 1]} : vector<64x3xf32> to vector<64x1xf32>
    %8 = vector.extract_strided_slice %0 {offsets = [1, 0], sizes = [1, 256], strides = [1, 1]} : vector<3x256xf32> to vector<1x256xf32>
    %9 = vector.broadcast %7 : vector<64x1xf32> to vector<64x256xf32>
    %10 = vector.broadcast %8 : vector<1x256xf32> to vector<64x256xf32>
    %11 = arith.mulf %9, %10 : vector<64x256xf32>
    %12 = arith.addf %6, %11 : vector<64x256xf32>
    %13 = vector.extract_strided_slice %1 {offsets = [0, 2], sizes = [64, 1], strides = [1, 1]} : vector<64x3xf32> to vector<64x1xf32>
    %14 = vector.extract_strided_slice %0 {offsets = [2, 0], sizes = [1, 256], strides = [1, 1]} : vector<3x256xf32> to vector<1x256xf32>
    %15 = vector.broadcast %13 : vector<64x1xf32> to vector<64x256xf32>
    %16 = vector.broadcast %14 : vector<1x256xf32> to vector<64x256xf32>
    %17 = arith.mulf %15, %16 : vector<64x256xf32>
    %18 = arith.addf %12, %17 : vector<64x256xf32>
    %c0_3 = arith.constant 0 : index
    %c0_4 = arith.constant 0 : index
    %19 = vector.load %arg3[%c0_3, %c0_4] : memref<64x1xf32, #tpu.memory_space<vmem>>, vector<64x1xf32>
    %20 = vector.broadcast %19 : vector<64x1xf32> to vector<64x256xf32>
    %21 = arith.addf %18, %20 : vector<64x256xf32>
    %cst = arith.constant 0.000000e+00 : f32
    %22 = vector.broadcast %cst : f32 to vector<64x256xf32>
    %23 = arith.maximumf %21, %22 : vector<64x256xf32>
    %c0_5 = arith.constant 0 : index
    %c0_6 = arith.constant 0 : index
    %24 = vector.load %arg4[%c0_5, %c0_6] : memref<32x64xf32, #tpu.memory_space<vmem>>, vector<32x64xf32>
    %cst_7 = arith.constant dense<0.000000e+00> : vector<32x256xf32>
    %25 = tpu.matmul %24, %23, %cst_7 {dimension_numbers = #tpu.dot_dimension_numbers<[1], [0], [0], [1], [0, 0, 1, 1], [], []>, precision = #tpu.contract_precision<fp32>} : vector<32x64xf32>, vector<64x256xf32>, vector<32x256xf32> -> vector<32x256xf32>
    %c0_8 = arith.constant 0 : index
    %c0_9 = arith.constant 0 : index
    %26 = vector.load %arg5[%c0_8, %c0_9] : memref<32x1xf32, #tpu.memory_space<vmem>>, vector<32x1xf32>
    %27 = vector.broadcast %26 : vector<32x1xf32> to vector<32x256xf32>
    %28 = arith.addf %25, %27 : vector<32x256xf32>
    %cst_10 = arith.constant 0.000000e+00 : f32
    %29 = vector.broadcast %cst_10 : f32 to vector<32x256xf32>
    %30 = arith.maximumf %28, %29 : vector<32x256xf32>
    %c0_11 = arith.constant 0 : index
    %c0_12 = arith.constant 0 : index
    %31 = vector.load %arg6[%c0_11, %c0_12] : memref<1x32xf32, #tpu.memory_space<vmem>>, vector<1x32xf32>
    %cst_13 = arith.constant dense<0.000000e+00> : vector<1x256xf32>
    %32 = tpu.matmul %31, %30, %cst_13 {dimension_numbers = #tpu.dot_dimension_numbers<[1], [0], [0], [1], [0, 0, 1, 1], [], []>, precision = #tpu.contract_precision<fp32>} : vector<1x32xf32>, vector<32x256xf32>, vector<1x256xf32> -> vector<1x256xf32>
    %c0_14 = arith.constant 0 : index
    %c0_15 = arith.constant 0 : index
    %33 = vector.load %arg7[%c0_14, %c0_15] : memref<1x1xf32, #tpu.memory_space<vmem>>, vector<1x1xf32>
    %34 = vector.broadcast %33 : vector<1x1xf32> to vector<1x256xf32>
    %35 = arith.addf %32, %34 : vector<1x256xf32>
    %36 = arith.negf %35 : vector<1x256xf32>
    %37 = math.exp %36 : vector<1x256xf32>
    %cst_16 = arith.constant 1.000000e+00 : f32
    %38 = vector.broadcast %cst_16 : f32 to vector<1x256xf32>
    %39 = arith.addf %38, %37 : vector<1x256xf32>
    %40 = arith.divf %38, %39 : vector<1x256xf32>
    %c0_17 = arith.constant 0 : index
    %c0_18 = arith.constant 0 : index
    %41 = vector.load %arg8[%c0_17, %c0_18] : memref<1x256xf32, #tpu.memory_space<vmem>>, vector<1x256xf32>
    tpu.vector_store %arg8[%c0_17, %c0_18], %40 {strides = array<i32>} : memref<1x256xf32, #tpu.memory_space<vmem>>, vector<1x256xf32>,
    return
  }
  func.func @transform_0(%arg0: i32) -> (i32, i32) {
    %c0_i32 = arith.constant 0 : i32
    %c0_i32_0 = arith.constant 0 : i32
    return %c0_i32, %arg0 : i32, i32
  }
  func.func @transform_1(%arg0: i32) -> (i32, i32) {
    %c0_i32 = arith.constant 0 : i32
    %c0_i32_0 = arith.constant 0 : i32
    %c0_i32_1 = arith.constant 0 : i32
    return %c0_i32, %c0_i32_0 : i32, i32
  }
  func.func @transform_2(%arg0: i32) -> (i32, i32) {
    %c0_i32 = arith.constant 0 : i32
    %c0_i32_0 = arith.constant 0 : i32
    %c0_i32_1 = arith.constant 0 : i32
    return %c0_i32, %c0_i32_0 : i32, i32
  }
  func.func @transform_3(%arg0: i32) -> (i32, i32) {
    %c0_i32 = arith.constant 0 : i32
    %c0_i32_0 = arith.constant 0 : i32
    %c0_i32_1 = arith.constant 0 : i32
    return %c0_i32, %c0_i32_0 : i32, i32
  }
  func.func @transform_4(%arg0: i32) -> (i32, i32) {
    %c0_i32 = arith.constant 0 : i32
    %c0_i32_0 = arith.constant 0 : i32
    %c0_i32_1 = arith.constant 0 : i32
    return %c0_i32, %c0_i32_0 : i32, i32
  }
  func.func @transform_5(%arg0: i32) -> (i32, i32) {
    %c0_i32 = arith.constant 0 : i32
    %c0_i32_0 = arith.constant 0 : i32
    %c0_i32_1 = arith.constant 0 : i32
    return %c0_i32, %c0_i32_0 : i32, i32
  }
  func.func @transform_6(%arg0: i32) -> (i32, i32) {
    %c0_i32 = arith.constant 0 : i32
    %c0_i32_0 = arith.constant 0 : i32
    %c0_i32_1 = arith.constant 0 : i32
    return %c0_i32, %c0_i32_0 : i32, i32
  }
  func.func @transform_7(%arg0: i32) -> (i32, i32) {
    %c0_i32 = arith.constant 0 : i32
    %c0_i32_0 = arith.constant 0 : i32
    return %c0_i32, %arg0 : i32, i32
  }
}

</mosaic_0001>

<bundles_post_ra>
// kernel: simple_nn_forward.1
= control target key start
LH: loop header
LB: loop body
LE: loop exit
PB: predicated region body
PF: predicated region fallthrough
CT: control target
= control target key end

     0   :  { %s2229_s0 = inlined_call_operand.vmem [shape: f32[3,256], index: 0, kind: input, shape index: {}]   ;;  %s2230_s1 = inlined_call_operand.vmem [shape: f32[64,3], index: 1, kind: input, shape index: {}]   ;;  %s2231_s2 = inlined_call_operand.vmem [shape: f32[64,1], index: 2, kind: input, shape index: {}]   ;;  %s2232_s3 = inlined_call_operand.vmem [shape: f32[32,64], index: 3, kind: input, shape index: {}]   ;;  %s2233_s4 = inlined_call_operand.vmem [shape: f32[32,1], index: 4, kind: input, shape index: {}]   ;;  %s2234_s5 = inlined_call_operand.vmem [shape: f32[1,32], index: 5, kind: input, shape index: {}]   ;;  %s2235_s6 = inlined_call_operand.<no memory space> [shape: f32[1,1], index: 6, kind: input, shape index: {}]   ;;  %s2236_s7 = inlined_call_operand.hbm [shape: f32[1,256], index: 7, kind: output, shape index: {}]  }
   0x1   :  { %v12_v0 = vstv %s2235_s6 }
   0x2   :  { %13 = vst [vmem:[#allocation2] sm:$0x1] %v12_v0 }
   0x3   :  { %v37_v1 = vld [vmem:[%s2230_s1 + $0x38] sm:$0xff]  ;;  %v36_v2 = vld [vmem:[%s2230_s1 + $0x30] sm:$0xff]  ;;  %v1539_v3 = vmov 2   ;;  %v1540_v4 = vmov 1  }
   0x4   :  { %1486 = vset.pattern.permute.xlu2 %v1539_v3  ;;  %1483 = vset.pattern.permute.xlu0 %v1540_v4 }
   0x5   :  { %14 = vsyncpa [#allocation4], 0  ;;  %v1541_v5 = vmov 0   ;;  %200 = vperm.xlu2 %1486, %v37_v1   ;;  %130 = vperm.xlu0 %1483, %v37_v1   ;;  %v33_v6 = vld [vmem:[%s2230_s1 + $0x18] sm:$0xff]  ;;  %v35_v7 = vld [vmem:[%s2230_s1 + $0x28] sm:$0xff]  ;;  %vm349_vm0 = vcmask 523264  }
   0x6   :  { %1484 = vset.pattern.permute.xlu1 %v1541_v5  ;;  %v34_v8 = vld [vmem:[%s2230_s1 + $0x20] sm:$0xff]  ;;  %v248_v9 = vld [vmem:[%s2231_s2 + $0x38] sm:$0xff]  ;;  %v247_v11 = vld [vmem:[%s2231_s2 + $0x30] sm:$0xff]  ;;  %vm1038_vm1 = vcmask 261120   ;;  %vm1453_vm9 = vcmask 1040384  }
   0x7   :  { %70 = vperm.xlu1 %1484, %v36_v2   ;;  %v245_v10 = vld [vmem:[%s2231_s2 + $0x20] sm:$0xff]  ;;  %v32_v12 = vld [vmem:[%s2230_s1 + $0x10] sm:$0xff]  ;;  %v246_v14 = vld [vmem:[%s2231_s2 + $0x28] sm:$0xff] }
   0x8   :  { %v30_v13 = vld [vmem:[%s2230_s1] sm:$0xff]  ;;  %v31_v15 = vld [vmem:[%s2230_s1 + $0x8] sm:$0xff]  ;;  %v244_v18 = vld [vmem:[%s2231_s2 + $0x18] sm:$0xff]  ;;  %s1468_s1 = sshll.u32 %s2236_s7, 4  ;;  %s1469_s1 = int_to_ptr.hbm [resolvable:$true] %s1468_s1 }
   0x9   :  { %v29_v16 = vld [vmem:[%s2229_s0] sm:$0x77]  ;;  %v243_v22 = vld [vmem:[%s2231_s2 + $0x10] sm:$0xff]  ;;  %v242_v24 = vld [vmem:[%s2231_s2 + $0x8] sm:$0xff] }
   0xa   :  { %v204_v17 = vperm.slane %v29_v16, 6  ;;  %v80_v23 = vperm.slane %v29_v16, 4  ;;  %v241_v28 = vld [vmem:[%s2231_s2] sm:$0xff]  ;;  %v328_v29 = vld [vmem:[%s2233_s4 + $0x18] sm:$0xff]  ;;  %v326_v32 = vld [vmem:[%s2233_s4 + $0x8] sm:$0xff]  ;;  %v134_v33 = vperm.slane %v29_v16, 5 }
   0xb   :  { %v325_v34 = vld [vmem:[%s2233_s4] sm:$0xff]  ;;  %v133_v43 = vperm.slane %v29_v16, 1  ;;  %v79_v45 = vperm.slane %v29_v16, 0  ;;  %v203_v53 = vperm.slane %v29_v16, 2 }
   0xc   :  { %v1637_v19 = vperm.slane %v204_v17, 2  ;;  %v1651_v25 = vperm.slane %v80_v23, 0  ;;  %v1670_v35 = vperm.slane %v134_v33, 1  ;;  %v1031_v42 = vld [vmem:[#allocation2] sm:$0x1] }
   0xd   :  { %1487 = vset.pattern.permute.xlu2 %v1541_v5  ;;  %114 = vperm.xlu0 %1483, %v33_v6   ;;  %v1683_v49 = vperm.slane %v133_v43, 1  ;;  %v1689_v54 = vperm.slane %v79_v45, 0  ;;  %v1694_v58 = vperm.slane %v203_v53, 2 }
   0xe   :  { %65 = vperm.xlu2 %1487, %v35_v7  }
   0xf   :  { %1485 = vset.pattern.permute.xlu1 %v1540_v4 }
  0x10   :  { %126 = vperm.xlu1 %1485, %v36_v2  }
  0x15   :  { %1491 = vset.pattern.permute.xlu0 %v1541_v5 }
  0x16   :  { %1488 = vset.pattern.permute.xlu2 %v1539_v3  ;;  %75 = vperm.xlu0 %1491, %v37_v1  }
  0x17   :  { %196 = vperm.xlu2 %1488, %v36_v2  }
  0x18   :  { %122 = vperm.xlu1 %1485, %v35_v7  }
  0x1e   :  { %60 = vperm.xlu0 %1491, %v34_v8  }
  0x1f   :  { %192 = vperm.xlu2 %1488, %v35_v7  }
  0x20   :  { %118 = vperm.xlu1 %1485, %v34_v8  }
  0x26   :  { %271 = vperm.xlu0 %1491, %v245_v10  }
  0x27   :  { %1490 = vset.pattern.permute.xlu2 %v1541_v5 }
  0x28   :  { %1489 = vset.pattern.permute.xlu1 %v1541_v5  ;;  %55 = vperm.xlu2 %1490, %v33_v6  }
  0x29   :  { %286 = vperm.xlu1 %1489, %v248_v9  }
  0x2e   :  { %1498 = vset.pattern.permute.xlu0 %v1539_v3 }
  0x2f   :  { %184 = vperm.xlu0 %1498, %v33_v6  }
  0x30   :  { %281 = vperm.xlu2 %1490, %v247_v11  }
  0x31   :  { %1492 = vset.pattern.permute.xlu1 %v1539_v3 }
  0x32   :  { %188 = vperm.xlu1 %1492, %v34_v8  }
  0x37   :  { %172 = vperm.xlu0 %1498, %v30_v13  }
  0x38   :  { %1494 = vset.pattern.permute.xlu2 %v1540_v4 }
  0x39   :  { %110 = vperm.xlu2 %1494, %v32_v12  }
  0x3a   :  { %1493 = vset.pattern.permute.xlu1 %v1541_v5 }
  0x3b   :  { %50 = vperm.xlu1 %1493, %v32_v12  }
  0x3f   :  { %1504 = vset.pattern.permute.xlu0 %v1541_v5 }
  0x41   :  { %1495 = vset.pattern.permute.xlu2 %v1541_v5 }
  0x42   :  { %45 = vperm.xlu2 %1495, %v31_v15  }
  0x43   :  { %276 = vperm.xlu1 %1493, %v246_v14  }
  0x4a   :  { %1497 = vset.pattern.permute.xlu2 %v1539_v3 }
  0x4b   :  { %1496 = vset.pattern.permute.xlu1 %v1540_v4  ;;  %180 = vperm.xlu2 %1497, %v32_v12  }
  0x4c   :  { %106 = vperm.xlu1 %1496, %v31_v15  }
  0x53   :  { %1500 = vset.pattern.permute.xlu2 %v1540_v4 }
  0x54   :  { %1499 = vset.pattern.permute.xlu1 %v1541_v5  ;;  %102 = vperm.xlu2 %1500, %v30_v13  }
  0x55   :  { %40 = vperm.xlu1 %1499, %v30_v13  }
  0x5c   :  { %1502 = vset.pattern.permute.xlu2 %v1541_v5 }
  0x5d   :  { %1501 = vset.pattern.permute.xlu1 %v1539_v3  ;;  %266 = vperm.xlu2 %1502, %v244_v18  }
  0x5e   :  { %176 = vperm.xlu1 %1501, %v31_v15  }
  0x5f   :  { %v1640_v20 = vpop.permute.xlu2 %200 }
  0x60   :  { %v224_v21 = vmul.f32 %v1637_v19, %v1640_v20 }
  0x65   :  { %256 = vperm.xlu2 %1502, %v242_v24  }
  0x66   :  { %1503 = vset.pattern.permute.xlu1 %v1541_v5 }
  0x67   :  { %261 = vperm.xlu1 %1503, %v243_v22  }
  0x68   :  { %v1653_v26 = vpop.permute.xlu2 %65 }
  0x69   :  { %v96_v27 = vmul.f32 %v1651_v25, %v1653_v26 }
  0x6d   :  { %346 = vperm.xlu2 %1502, %v328_v29  }
  0x6f   :  { %251 = vperm.xlu1 %1503, %v241_v28  }
  0x71   :  { %v197_v30 = vpop.permute.xlu2 %196 }
  0x72   :  { %v222_v31 = vmul.f32 %v1637_v19, %v197_v30  ;;  %v221_v63 = vmul.f32 %v1694_v58, %v197_v30 }
  0x75   :  { %331 = vperm.xlu2 %1502, %v325_v34  }
  0x77   :  { %336 = vperm.xlu1 %1503, %v326_v32   ;;  %v131_v37 = vpop.permute.xlu0 %130 }
  0x78   :  { %v154_v39 = vmul.f32 %v1670_v35, %v131_v37  ;;  %v153_v9 = vmul.f32 %v1683_v49, %v131_v37 }
  0x79   :  { %v71_v36 = vpop.permute.xlu1 %70  ;;  %v1674_v40 = vpop.permute.xlu2 %192 }
  0x7a   :  { %v98_v38 = vmul.f32 %v1651_v25, %v71_v36  ;;  %v220_v41 = vmul.f32 %v1637_v19, %v1674_v40  ;;  %v97_v59 = vmul.f32 %v1689_v54, %v71_v36 }
  0x7f   :  { %1034 = vperm.xlu1 %1503, %v1031_v42   ;;  %v1678_v44 = vpop.permute.xlu0 %114 }
  0x80   :  { %v146_v47 = vmul.f32 %v1670_v35, %v1678_v44 }
  0x82   :  { %v127_v46 = vpop.permute.xlu1 %126  ;;  %v1685_v50 = vpop.permute.xlu2 %55 }
  0x83   :  { %v152_v48 = vmul.f32 %v1670_v35, %v127_v46  ;;  %v92_v52 = vmul.f32 %v1651_v25, %v1685_v50  ;;  %v151_v57 = vmul.f32 %v1683_v49, %v127_v46 }
  0x85   :  { %v168_v51 = vadd.f32 %v152_v48, %v98_v38  ;;  %v1691_v55 = vadd.f32 %v146_v47, %v92_v52  ;;  %v167_v0 = vadd.f32 %v151_v57, %v97_v59 }
  0x87   :  { %v238_v56 = vadd.f32 %v222_v31, %v168_v51  ;;  %v237_v7 = vadd.f32 %v221_v63, %v167_v0 }
  0x88   :  { %v76_v62 = vpop.permute.xlu0 %75 }
  0x89   :  { %v100_v1 = vmul.f32 %v1651_v25, %v76_v62  ;;  %v99_v10 = vmul.f32 %v1689_v54, %v76_v62 }
  0x8a   :  { %v1697_v60 = vpop.permute.xlu1 %122  ;;  %v282_v3 = vpop.permute.xlu2 %281 }
  0x8b   :  { %v150_v61 = vmul.f32 %v1670_v35, %v1697_v60  ;;  %v170_v4 = vadd.f32 %v154_v39, %v100_v1  ;;  %v1703_v5 = vadd.f32 %v282_v3, %v238_v56  ;;  %v301_v11 = vadd.f32 %v282_v3, %v237_v7 }
  0x8c   :  { %v169_v16 = vadd.f32 %v153_v9, %v99_v10  ;;  %v149_v0 = vmul.f32 %v1683_v49, %v1697_v60  ;;  %v95_v3 = vmul.f32 %v1689_v54, %v1653_v26  ;;  %v145_v60 = vmul.f32 %v1683_v49, %v1678_v44 }
  0x8d   :  { %v166_v2 = vadd.f32 %v150_v61, %v96_v27  ;;  %v240_v8 = vadd.f32 %v224_v21, %v170_v4  ;;  %v317_v17 = vmax.f32 %v301_v11, 0.0  ;;  %v223_v21 = vmul.f32 %v1694_v58, %v1640_v20 }
  0x8e   :  { %v91_v11 = vmul.f32 %v1689_v54, %v1685_v50 }
  0x8f   :  { %v1705_v6 = vadd.f32 %v220_v41, %v166_v2  ;;  %v1717_v24 = vand.u32 4294901760, %v317_v17  ;;  %v239_v27 = vadd.f32 %v223_v21, %v169_v16 }
  0x90   :  { %v61_v14 = vpop.permute.xlu0 %60 }
  0x91   :  { %v94_v15 = vmul.f32 %v1651_v25, %v61_v14  ;;  %v1724_v33 = vsub.f32 %v317_v17, %v1717_v24  ;;  %v93_v38 = vmul.f32 %v1689_v54, %v61_v14 }
  0x92   :  { %v119_v12 = vpop.permute.xlu1 %118 }
  0x93   :  { %v148_v13 = vmul.f32 %v1670_v35, %v119_v12  ;;  %v1711_v22 = vpop.permute.xlu2 %110  ;;  %v147_v37 = vmul.f32 %v1683_v49, %v119_v12  ;;  %v435_v41 = vand.u32 4294901760, %v1724_v33 }
  0x94   :  { %v144_v23 = vmul.f32 %v1670_v35, %v1711_v22 }
  0x95   :  { %v164_v18 = vadd.f32 %v148_v13, %v94_v15  ;;  %v163_v48 = vadd.f32 %v147_v37, %v93_v38  ;;  %v436_v53 = vsub.f32 %v1724_v33, %v435_v41  ;;  %v161_v15 = vadd.f32 %v145_v60, %v91_v11 }
  0x97   :  { %v437_v63 = vand.u32 4294901760, %v436_v53 }
  0x98   :  { %v1721_v31 = vpop.permute.xlu0 %271 }
  0x9b   :  { %v287_v28 = vpop.permute.xlu1 %286 }
  0x9c   :  { %v303_v29 = vadd.f32 %v287_v28, %v239_v27  ;;  %v1719_v30 = vadd.f32 %v287_v28, %v240_v8  ;;  %v1726_v34 = vpop.permute.xlu2 %45  ;;  %v165_v8 = vadd.f32 %v149_v0, %v95_v3  ;;  %v321_v3 = vld [vmem:[%s2232_s3] sm:$0xff] }
  0x9d   :  { %v1732_v20 = vmul.f32 %v1651_v25, %v1726_v34 }
  0x9e   :  { %v319_v32 = vmax.f32 %v303_v29, 0.0  ;;  %v320_v60 = vmax.f32 %v1719_v30, 0.0 }
  0xa0   :  { %v1728_v36 = vand.u32 4294901760, %v319_v32 }
  0xa1   :  { %v185_v47 = vpop.permute.xlu0 %184 }
  0xa2   :  { %371 = vmatpush.msra.mxu0 %v1728_v36  ;;  %554 = vmatpush.msra.mxu3 %v1728_v36  ;;  %v1739_v39 = vsub.f32 %v319_v32, %v1728_v36  ;;  %v216_v51 = vmul.f32 %v1637_v19, %v185_v47  ;;  %v215_v16 = vmul.f32 %v1694_v58, %v185_v47 }
  0xa4   :  { %v189_v42 = vpop.permute.xlu1 %188  ;;  %373 = vmatpush.msra.mxu0 %v1717_v24  ;;  %502 = vmatpush.msra.mxu2 %v1739_v39  ;;  %v429_v43 = vand.u32 4294901760, %v1739_v39  ;;  %v1761_v62 = vadd.f32 %v216_v51, %v1691_v55  ;;  %v219_v55 = vmul.f32 %v1694_v58, %v1674_v40  ;;  %v231_v44 = vadd.f32 %v215_v16, %v161_v15 }
  0xa5   :  { %v217_v45 = vmul.f32 %v1694_v58, %v189_v42  ;;  %v218_v46 = vmul.f32 %v1637_v19, %v189_v42  ;;  %556 = vmatpush.msra.mxu3 %v1717_v24  ;;  %v1758_v59 = vpop.permute.xlu2 %180 }
  0xa6   :  { %505 = vmatpush.msra.mxu2 %v1724_v33  ;;  %v430_v52 = vsub.f32 %v1739_v39, %v429_v43  ;;  %v214_v4 = vmul.f32 %v1637_v19, %v1758_v59  ;;  %v235_v13 = vadd.f32 %v219_v55, %v165_v8  ;;  %v213_v16 = vmul.f32 %v1694_v58, %v1758_v59 }
  0xa7   :  { %v1756_v56 = vadd.f32 %v218_v46, %v164_v18  ;;  %v233_v57 = vadd.f32 %v217_v45, %v163_v48 }
  0xa8   :  { %v431_v61 = vand.u32 4294901760, %v430_v52 }
  0xa9   :  { %v297_v1 = vadd.f32 %v1721_v31, %v233_v57  ;;  %v298_v30 = vadd.f32 %v1721_v31, %v1756_v56  ;;  %v322_v31 = vld [vmem:[%s2232_s3 + $0x8] sm:$0xff] }
  0xaa   :  { %432 = vmatpush.msra.mxu1 %v431_v61 }
  0xab   :  { %v313_v9 = vmax.f32 %v297_v1, 0.0  ;;  %v87_v1 = vmul.f32 %v1689_v54, %v1726_v34  ;;  %v351_v34 = vsel %vm349_vm0, %v321_v3, 0 }
  0xac   :  { %438 = vmatpush.msra.mxu1 %v437_v63 }
  0xad   :  { %v51_v2 = vpop.permute.xlu1 %50  ;;  %v1781_v14 = vand.u32 4294901760, %v313_v9 }
  0xae   :  { %v90_v7 = vmul.f32 %v1651_v25, %v51_v2  ;;  %v1777_v12 = vpop.permute.xlu2 %102 }
  0xb0   :  { %v160_v10 = vadd.f32 %v144_v23, %v90_v7  ;;  %v1785_v23 = vsub.f32 %v313_v9, %v1781_v14  ;;  %v89_v7 = vmul.f32 %v1689_v54, %v51_v2 }
  0xb2   :  { %v1779_v26 = vadd.f32 %v214_v4, %v160_v10  ;;  %v447_v29 = vand.u32 4294901760, %v1785_v23  ;;  %v143_v4 = vmul.f32 %v1683_v49, %v1711_v22 }
  0xb4   :  { %v448_v47 = vsub.f32 %v1785_v23, %v447_v29  ;;  %v159_v22 = vadd.f32 %v143_v4, %v89_v7 }
  0xb5   :  { %v277_v40 = vpop.permute.xlu1 %276 }
  0xb6   :  { %v299_v17 = vadd.f32 %v277_v40, %v235_v13  ;;  %v449_v53 = vand.u32 4294901760, %v448_v47  ;;  %v300_v11 = vadd.f32 %v277_v40, %v1705_v6  ;;  %v139_v6 = vmul.f32 %v1683_v49, %v1777_v12 }
  0xb7   :  { %v267_v50 = vpop.permute.xlu2 %266  ;;  %v140_v40 = vmul.f32 %v1670_v35, %v1777_v12  ;;  %v229_v47 = vadd.f32 %v213_v16, %v159_v22 }
  0xb8   :  { %v315_v18 = vmax.f32 %v299_v17, 0.0  ;;  %v295_v27 = vadd.f32 %v267_v50, %v231_v44  ;;  %v318_v44 = vmax.f32 %v1703_v5, 0.0  ;;  %v173_v5 = vpop.permute.xlu0 %172 }
  0xba   :  { %v1787_v21 = vand.u32 4294901760, %v315_v18  ;;  %v311_v32 = vmax.f32 %v295_v27, 0.0  ;;  %v1839_v27 = vand.u32 4294901760, %v320_v60 }
  0xbc   :  { %375 = vmatpush.msra.mxu0 %v1787_v21  ;;  %558 = vmatpush.msra.mxu3 %v1787_v21  ;;  %v1792_v28 = vsub.f32 %v315_v18, %v1787_v21  ;;  %v1798_v42 = vand.u32 4294901760, %v311_v32  ;;  %v1836_v18 = vand.u32 4294901760, %v351_v34 }
  0xbe   :  { %v107_v37 = vpop.permute.xlu1 %106  ;;  %377 = vmatpush.msra.mxu0 %v1781_v14  ;;  %508 = vmatpush.msra.mxu2 %v1792_v28  ;;  %v441_v38 = vand.u32 4294901760, %v1792_v28  ;;  %v1813_v51 = vsub.f32 %v311_v32, %v1798_v42  ;;  %v316_v32 = vmax.f32 %v300_v11, 0.0 }
  0xbf   :  { %v142_v45 = vmul.f32 %v1670_v35, %v107_v37  ;;  %560 = vmatpush.msra.mxu3 %v1781_v14  ;;  %v141_v0 = vmul.f32 %v1683_v49, %v107_v37  ;;  %v257_v17 = vpop.permute.xlu2 %256  ;;  %v296_v37 = vadd.f32 %v267_v50, %v1761_v62  ;;  %v1856_v49 = vsub.f32 %v351_v34, %v1836_v18 }
  0xc0   :  { %511 = vmatpush.msra.mxu2 %v1785_v23  ;;  %v442_v46 = vsub.f32 %v1792_v28, %v441_v38  ;;  %379 = vmatpush.msra.mxu0 %v1798_v42  ;;  %v453_v57 = vand.u32 4294901760, %v1813_v51  ;;  %v1858_v35 = vand.u32 4294901760, %v318_v44  ;;  %v1861_v62 = vsub.f32 %v320_v60, %v1839_v27 }
  0xc1   :  { %v158_v48 = vadd.f32 %v142_v45, %v1732_v20  ;;  %562 = vmatpush.msra.mxu3 %v1798_v42  ;;  %v157_v8 = vadd.f32 %v141_v0, %v87_v1  ;;  %v209_v50 = vmul.f32 %v1694_v58, %v173_v5  ;;  %v1873_v4 = vand.u32 4294901760, %v1856_v49 }
  0xc2   :  { %v443_v52 = vand.u32 4294901760, %v442_v46  ;;  %514 = vmatpush.msra.mxu2 %v1813_v51  ;;  %v454_v61 = vsub.f32 %v1813_v51, %v453_v57  ;;  %v1876_v7 = vsub.f32 %v318_v44, %v1858_v35 }
  0xc3   :  { %v389_v22 = vsub.f32 %v1856_v49, %v1873_v4 }
  0xc4   :  { %444 = vmatpush.msra.mxu1 %v443_v52  ;;  %v455_v63 = vand.u32 4294901760, %v454_v61  ;;  %v210_v52 = vmul.f32 %v1637_v19, %v173_v5  ;;  %v312_v61 = vmax.f32 %v296_v37, 0.0  ;;  %v323_v37 = vld [vmem:[%s2232_s3 + $0x10] sm:$0xff] }
  0xc6   :  { %450 = vmatpush.msra.mxu1 %v449_v53  ;;  %v354_v53 = vsel %vm349_vm0, %v322_v31, 0 }
  0xc7   :  { %v41_v20 = vpop.permute.xlu1 %40 }
  0xc8   :  { %456 = vmatpush.msra.mxu1 %v455_v63  ;;  %v85_v45 = vmul.f32 %v1689_v54, %v41_v20  ;;  %v86_v46 = vmul.f32 %v1651_v25, %v41_v20  ;;  %v314_v54 = vmax.f32 %v298_v30, 0.0  ;;  %v1863_v25 = vand.u32 4294901760, %v316_v32 }
  0xca   :  { %v155_v20 = vadd.f32 %v139_v6, %v85_v45  ;;  %v156_v63 = vadd.f32 %v140_v40, %v86_v46 }
  0xcc   :  { %v225_v60 = vadd.f32 %v209_v50, %v155_v20  ;;  %v226_v34 = vadd.f32 %v210_v52, %v156_v63 }
  0xd0   :  { %v177_v55 = vpop.permute.xlu1 %176 }
  0xd1   :  { %v211_v9 = vmul.f32 %v1694_v58, %v177_v55  ;;  %v212_v10 = vmul.f32 %v1637_v19, %v177_v55  ;;  %v1880_v19 = vand.u32 4294901760, %v354_v53  ;;  %v1882_v55 = vand.u32 4294901760, %v314_v54 }
  0xd3   :  { %v227_v13 = vadd.f32 %v211_v9, %v157_v8  ;;  %v228_v15 = vadd.f32 %v212_v10, %v158_v48  ;;  %v1885_v8 = vsub.f32 %v316_v32, %v1863_v25  ;;  %v1888_v10 = vand.u32 4294901760, %v312_v61 }
  0xd4   :  { %v1902_v30 = vsub.f32 %v354_v53, %v1880_v19  ;;  %v765_v32 = vand.u32 4294901760, %v1876_v7 }
  0xd5   :  { %v291_v2 = vadd.f32 %v257_v17, %v227_v13  ;;  %v292_v9 = vadd.f32 %v257_v17, %v228_v15  ;;  %v1916_v45 = vsub.f32 %v312_v61, %v1888_v10  ;;  %v357_v61 = vsel %vm349_vm0, %v323_v37, 0 }
  0xd6   :  { %v1933_v53 = vand.u32 4294901760, %v1902_v30  ;;  %v766_v63 = vsub.f32 %v1876_v7, %v765_v32 }
  0xd7   :  { %v307_v59 = vmax.f32 %v291_v2, 0.0  ;;  %v308_v6 = vmax.f32 %v292_v9, 0.0 }
  0xd8   :  { %v767_v37 = vand.u32 4294901760, %v766_v63 }
  0xd9   :  { %v262_v56 = vpop.permute.xlu1 %261  ;;  %v1853_v48 = vand.u32 4294901760, %v307_v59  ;;  %v1936_v20 = vand.u32 4294901760, %v308_v6 }
  0xda   :  { %v293_v12 = vadd.f32 %v262_v56, %v229_v47  ;;  %v294_v1 = vadd.f32 %v262_v56, %v1779_v26  ;;  %v759_v26 = vand.u32 4294901760, %v1861_v62  ;;  %v771_v47 = vand.u32 4294901760, %v1885_v8 }
  0xdb   :  { %v1870_v3 = vsub.f32 %v307_v59, %v1853_v48  ;;  %v1910_v59 = vsub.f32 %v314_v54, %v1882_v55  ;;  %v1925_v54 = vand.u32 4294901760, %v389_v22 }
  0xdc   :  { %v309_v0 = vmax.f32 %v293_v12, 0.0  ;;  %v310_v13 = vmax.f32 %v294_v1, 0.0  ;;  %v760_v40 = vsub.f32 %v1861_v62, %v759_v26 }
  0xdd   :  { %v465_v15 = vand.u32 4294901760, %v1870_v3 }
  0xde   :  { %v1878_v58 = vand.u32 4294901760, %v309_v0  ;;  %v1923_v31 = vand.u32 4294901760, %v310_v13  ;;  %v761_v1 = vand.u32 4294901760, %v760_v40  ;;  %v397_v40 = vsub.f32 %v1902_v30, %v1933_v53 }
  0xdf   :  { %v466_v12 = vsub.f32 %v1870_v3, %v465_v15 }
  0xe0   :  { %381 = vmatpush.msra.mxu0 %v1878_v58  ;;  %564 = vmatpush.msra.mxu3 %v1878_v58  ;;  %v1893_v11 = vsub.f32 %v309_v0, %v1878_v58  ;;  %v777_v0 = vand.u32 4294901760, %v1910_v59 }
  0xe1   :  { %v252_v16 = vpop.permute.xlu1 %251  ;;  %v467_v22 = vand.u32 4294901760, %v466_v12 }
  0xe2   :  { %v289_v17 = vadd.f32 %v252_v16, %v225_v60  ;;  %v290_v2 = vadd.f32 %v252_v16, %v226_v34  ;;  %383 = vmatpush.msra.mxu0 %v1853_v48  ;;  %517 = vmatpush.msra.mxu2 %v1893_v11  ;;  %v459_v44 = vand.u32 4294901760, %v1893_v11  ;;  %v772_v60 = vsub.f32 %v1885_v8, %v771_v47 }
  0xe3   :  { %566 = vmatpush.msra.mxu3 %v1853_v48  ;;  %v1950_v34 = vsub.f32 %v310_v13, %v1923_v31  ;;  %v783_v13 = vand.u32 4294901760, %v1916_v45 }
  0xe4   :  { %v305_v46 = vmax.f32 %v289_v17, 0.0  ;;  %520 = vmatpush.msra.mxu2 %v1870_v3  ;;  %v460_v5 = vsub.f32 %v1893_v11, %v459_v44  ;;  %v306_v56 = vmax.f32 %v290_v2, 0.0  ;;  %v1956_v17 = vand.u32 4294901760, %v357_v61 }
  0xe5   :  { %v773_v12 = vand.u32 4294901760, %v772_v60 }
  0xe6   :  { %v1930_v50 = vand.u32 4294901760, %v305_v46  ;;  %v461_v52 = vand.u32 4294901760, %v460_v5  ;;  %v1952_v16 = vand.u32 4294901760, %v306_v56  ;;  %v1969_v5 = vsub.f32 %v308_v6, %v1936_v20 }
  0xe7   :  { %v1981_v63 = vsub.f32 %v357_v61, %v1956_v17  ;;  %v784_v6 = vsub.f32 %v1916_v45, %v783_v13 }
  0xe8   :  { %385 = vmatpush.msra.mxu0 %v1930_v50  ;;  %462 = vmatpush.msra.mxu1 %v461_v52  ;;  %v1944_v9 = vsub.f32 %v305_v46, %v1930_v50  ;;  %v778_v46 = vsub.f32 %v1910_v59, %v777_v0  ;;  %v789_v52 = vand.u32 4294901760, %v1950_v34 }
  0xe9   :  { %568 = vmatpush.msra.mxu3 %v1930_v50  ;;  %391 = vmatmul.f32.vlgmr.msra.gmra.mxu0 %v1925_v54  ;;  %v785_v23 = vand.u32 4294901760, %v784_v6 }
  0xea   :  { %605 = vmatpush.msrb.mxu0 %v429_v43  ;;  %v471_v2 = vand.u32 4294901760, %v1944_v9  ;;  %468 = vmatpush.msra.mxu1 %v467_v22  ;;  %v1976_v43 = vsub.f32 %v306_v56, %v1952_v16  ;;  %v324_v56 = vld [vmem:[%s2232_s3 + $0x18] sm:$0xff]  ;;  %v779_v61 = vand.u32 4294901760, %v778_v46  ;;  %v790_v28 = vsub.f32 %v1950_v34, %v789_v52 }
  0xeb   :  { %762 = vmatpush.msrb.mxu3 %v761_v1  ;;  %523 = vmatpush.msra.mxu2 %v1944_v9  ;;  %v795_v1 = vand.u32 4294901760, %v1969_v5  ;;  %v360_v60 = vsel %vm349_vm0, %v324_v56, 0 }
  0xec   :  { %526 = vmatmul.f32.vlgmr.msra.gmra.mxu2 %v1856_v49  ;;  %609 = vmatpush.msrb.mxu0 %v435_v41  ;;  %v472_v39 = vsub.f32 %v1944_v9, %v471_v2  ;;  %v1986_v41 = vand.u32 4294901760, %v397_v40  ;;  %v2004_v9 = vand.u32 4294901760, %v1981_v63  ;;  %v2016_v22 = vand.u32 4294901760, %v360_v60 }
  0xed   :  { %701 = vmatpush.msrb.mxu2 %v1839_v27  ;;  %768 = vmatpush.msrb.mxu3 %v767_v37  ;;  %v791_v40 = vand.u32 4294901760, %v790_v28 }
  0xee   :  { %572 = vmatmul.f32.vlgmr.msra.gmra.mxu3 %v1873_v4  ;;  %613 = vmatpush.msrb.mxu0 %v441_v38  ;;  %v473_v33 = vand.u32 4294901760, %v472_v39  ;;  %v801_v38 = vand.u32 4294901760, %v1976_v43  ;;  %v2033_v11 = vsub.f32 %v360_v60, %v2016_v22 }
  0xef   :  { %703 = vmatpush.msrb.mxu2 %v1858_v35  ;;  %774 = vmatpush.msrb.mxu3 %v773_v12 }
  0xf0   :  { %617 = vmatpush.msrb.mxu0 %v447_v29  ;;  %474 = vmatpush.msra.mxu1 %v473_v33  ;;  %v796_v29 = vsub.f32 %v1969_v5, %v795_v1  ;;  %v802_v51 = vsub.f32 %v1976_v43, %v801_v38 }
  0xf1   :  { %705 = vmatpush.msrb.mxu2 %v1863_v25  ;;  %780 = vmatpush.msrb.mxu3 %v779_v61 }
  0xf2   :  { %399 = vmatmul.f32.gmra.mxu0 %v1986_v41  ;;  %476 = vmatmul.f32.vlgmr.msra.gmra.mxu1 %v1836_v18 }
  0xf3   :  { %621 = vmatpush.msrb.mxu0 %v453_v57  ;;  %660 = vmatpush.msrb.mxu1 %v1728_v36  ;;  %v405_v36 = vsub.f32 %v1981_v63, %v2004_v9  ;;  %v797_v57 = vand.u32 4294901760, %v796_v29 }
  0xf4   :  { %707 = vmatpush.msrb.mxu2 %v1882_v55  ;;  %786 = vmatpush.msrb.mxu3 %v785_v23 }
  0xf5   :  { %531 = vmatmul.f32.gmra.mxu2 %v1902_v30  ;;  %625 = vmatpush.msrb.mxu0 %v459_v44  ;;  %v803_v44 = vand.u32 4294901760, %v802_v51  ;;  %v2036_v37 = vand.u32 4294901760, %v405_v36 }
  0xf6   :  { %662 = vmatpush.msrb.mxu1 %v1717_v24  ;;  %709 = vmatpush.msrb.mxu2 %v1888_v10  ;;  %v2043_v24 = vand.u32 4294901760, %v2033_v11 }
  0xf7   :  { %792 = vmatpush.msrb.mxu3 %v791_v40  ;;  %629 = vmatpush.msrb.mxu0 %v465_v15  ;;  %v2132_v15 = vpop.permute.xlu2 %346 }
  0xf8   :  { %578 = vmatmul.f32.gmra.mxu3 %v1933_v53  ;;  %664 = vmatpush.msrb.mxu1 %v1787_v21 }
  0xf9   :  { %711 = vmatpush.msrb.mxu2 %v1923_v31  ;;  %798 = vmatpush.msrb.mxu3 %v797_v57 }
  0xfa   :  { %633 = vmatpush.msrb.mxu0 %v471_v2  ;;  %666 = vmatpush.msrb.mxu1 %v1781_v14  ;;  %v413_v14 = vsub.f32 %v2033_v11, %v2043_v24 }
  0xfb   :  { %713 = vmatpush.msrb.mxu2 %v1936_v20  ;;  %804 = vmatpush.msrb.mxu3 %v803_v44 }
  0xfc   :  { %832 = vmatpush.msra.mxu0 %v1861_v62  ;;  %480 = vmatmul.f32.gmra.mxu1 %v1880_v19  ;;  %v414_v21 = vand.u32 4294901760, %v413_v14 }
  0xfd   :  { %990 = vmatpush.msra.mxu3 %v1839_v27  ;;  %407 = vmatmul.f32.gmra.mxu0 %v2036_v37 }
  0xfe   :  { %668 = vmatpush.msrb.mxu1 %v1798_v42  ;;  %715 = vmatpush.msrb.mxu2 %v1952_v16  ;;  %v327_v42 = vld [vmem:[%s2233_s4 + $0x10] sm:$0xff] }
  0xff   :  { %835 = vmatpush.msra.mxu0 %v1876_v7  ;;  %992 = vmatpush.msra.mxu3 %v1858_v35 }
 0x100   :  { %935 = vmatpush.msra.mxu2 %v759_v26  ;;  %670 = vmatpush.msrb.mxu1 %v1878_v58 }
 0x101   :  { %536 = vmatmul.f32.gmra.mxu2 %v1981_v63  ;;  %838 = vmatpush.msra.mxu0 %v1885_v8 }
 0x102   :  { %939 = vmatpush.msra.mxu2 %v765_v32  ;;  %994 = vmatpush.msra.mxu3 %v1863_v25 }
 0x103   :  { %584 = vmatmul.f32.gmra.mxu3 %v2004_v9  ;;  %672 = vmatpush.msrb.mxu1 %v1853_v48 }
 0x104   :  { %841 = vmatpush.msra.mxu0 %v1910_v59  ;;  %943 = vmatpush.msra.mxu2 %v771_v47 }
 0x105   :  { %996 = vmatpush.msra.mxu3 %v1882_v55  ;;  %674 = vmatpush.msrb.mxu1 %v1930_v50 }
 0x106   :  { %844 = vmatpush.msra.mxu0 %v1916_v45  ;;  %947 = vmatpush.msra.mxu2 %v777_v0 }
 0x107   :  { %884 = vmatpush.msra.mxu1 %v1839_v27  ;;  %998 = vmatpush.msra.mxu3 %v1888_v10 }
 0x108   :  { %415 = vmatmul.f32.gmra.mxu0 %v414_v21  ;;  %484 = vmatmul.f32.gmra.mxu1 %v1956_v17 }
 0x109   :  { %847 = vmatpush.msra.mxu0 %v1950_v34  ;;  %886 = vmatpush.msra.mxu1 %v1858_v35 }
 0x10a   :  { %951 = vmatpush.msra.mxu2 %v783_v13  ;;  %1000 = vmatpush.msra.mxu3 %v1923_v31 }
 0x10b   :  { %541 = vmatmul.f32.gmra.mxu2 %v2033_v11  ;;  %850 = vmatpush.msra.mxu0 %v1969_v5 }
 0x10c   :  { %888 = vmatpush.msra.mxu1 %v1863_v25  ;;  %955 = vmatpush.msra.mxu2 %v789_v52 }
 0x10d   :  { %1002 = vmatpush.msra.mxu3 %v1936_v20  ;;  %853 = vmatpush.msra.mxu0 %v1976_v43 }
 0x10e   :  { %590 = vmatmul.f32.gmra.mxu3 %v2043_v24  ;;  %890 = vmatpush.msra.mxu1 %v1882_v55 }
 0x10f   :  { %959 = vmatpush.msra.mxu2 %v795_v1  ;;  %1004 = vmatpush.msra.mxu3 %v1952_v16 }
 0x110   :  { %892 = vmatpush.msra.mxu1 %v1888_v10  ;;  %635 = vmatmul.f32.vlgmr.msrb.gmra.mxu0 %v1836_v18 }
 0x111   :  { %963 = vmatpush.msra.mxu2 %v801_v38  ;;  %488 = vmatmul.f32.gmra.mxu1 %v2016_v22 }
 0x112   :  { %341 = vperm.xlu0 %1504, %v327_v42   ;;  %894 = vmatpush.msra.mxu1 %v1923_v31 }
 0x113   :  { %721 = vmatmul.f32.vlgmr.msrb.gmra.mxu2 %v1925_v54  ;;  %v2139_v54 = vpop.permute.xlu1 %336 }
 0x114   :  { %896 = vmatpush.msra.mxu1 %v1936_v20  ;;  %v2144_v20 = vpop.permute.xlu2 %331 }
 0x116   :  { %806 = vmatmul.f32.vlgmr.msrb.gmra.mxu3 %v1836_v18  ;;  %898 = vmatpush.msra.mxu1 %v1952_v16 }
 0x118   :  { %639 = vmatmul.f32.gmra.mxu0 %v1880_v19 }
 0x119   :  { %676 = vmatmul.f32.vlgmr.msrb.gmra.mxu1 %v1836_v18 }
 0x11b   :  { %729 = vmatmul.f32.gmra.mxu2 %v1986_v41 }
 0x11e   :  { %810 = vmatmul.f32.gmra.mxu3 %v1880_v19 }
 0x120   :  { %643 = vmatmul.f32.gmra.mxu0 %v1956_v17 }
 0x121   :  { %680 = vmatmul.f32.gmra.mxu1 %v1880_v19 }
 0x123   :  { %737 = vmatmul.f32.gmra.mxu2 %v2036_v37 }
 0x126   :  { %814 = vmatmul.f32.gmra.mxu3 %v1956_v17 }
 0x128   :  { %647 = vmatmul.f32.gmra.mxu0 %v2016_v22 }
 0x129   :  { %684 = vmatmul.f32.gmra.mxu1 %v1956_v17 }
 0x12b   :  { %745 = vmatmul.f32.gmra.mxu2 %v414_v21 }
 0x12e   :  { %818 = vmatmul.f32.gmra.mxu3 %v2016_v22 }
 0x130   :  { %856 = vmatmul.f32.vlgmr.msra.gmra.mxu0 %v1856_v49 }
 0x131   :  { %688 = vmatmul.f32.gmra.mxu1 %v2016_v22 }
 0x133   :  { %965 = vmatmul.f32.vlgmr.msra.gmra.mxu2 %v1836_v18 }
 0x136   :  { %1006 = vmatmul.f32.vlgmr.msra.gmra.mxu3 %v1836_v18 }
 0x138   :  { %861 = vmatmul.f32.gmra.mxu0 %v1902_v30 }
 0x139   :  { %902 = vmatmul.f32.vlgmr.msra.gmra.mxu1 %v1873_v4 }
 0x13b   :  { %969 = vmatmul.f32.gmra.mxu2 %v1880_v19 }
 0x13e   :  { %1010 = vmatmul.f32.gmra.mxu3 %v1880_v19 }
 0x140   :  { %866 = vmatmul.f32.gmra.mxu0 %v1981_v63  ;;  %v1030_v63 = vld [vmem:[%s2234_s5] sm:$0x1]  ;;  %s1542_s5 = smov [#allocation3]  }
 0x141   :  { %908 = vmatmul.f32.gmra.mxu1 %v1933_v53  ;;  %v1040_v38 = vsel %vm1038_vm1, %v1030_v63, 0  ;;  %s1466_s25 = sshll.u32 %s1542_s5, 4  ;;  %s1467_s25 = int_to_ptr.vmem [resolvable:$true] %s1466_s25 }
 0x142   :  { %v2157_v51 = vand.u32 4294901760, %v1040_v38 }
 0x143   :  { %973 = vmatmul.f32.gmra.mxu2 %v1956_v17 }
 0x146   :  { %1014 = vmatmul.f32.gmra.mxu3 %v1956_v17 }
 0x148   :  { %871 = vmatmul.f32.gmra.mxu0 %v2033_v11 }
 0x149   :  { %914 = vmatmul.f32.gmra.mxu1 %v2004_v9 }
 0x14b   :  { %977 = vmatmul.f32.gmra.mxu2 %v2016_v22 }
 0x14e   :  { %1018 = vmatmul.f32.gmra.mxu3 %v2016_v22 }
 0x151   :  { %920 = vmatmul.f32.gmra.mxu1 %v2043_v24  ;;  %v2162_v24 = vsub.f32 %v1040_v38, %v2157_v51 }
 0x166   :  { %v392_v18 = vpop.f32.mrf.mxu0 }
 0x167   :  { %v393_v0 = vadd.f32 %v392_v18, %v2144_v20 }
 0x16f   :  { %v527_v27 = vpop.f32.mrf.mxu2  ;;  %v400_v48 = vpop.f32.mrf.mxu0 }
 0x170   :  { %v477_v49 = vpop.f32.mrf.mxu1  ;;  %v401_v50 = vadd.f32 %v400_v48, %v2139_v54 }
 0x171   :  { %v573_v35 = vpop.f32.mrf.mxu3  ;;  %v478_v17 = vadd.f32 %v477_v49, %v393_v0 }
 0x173   :  { %v528_v43 = vadd.f32 %v527_v27, %v478_v17 }
 0x175   :  { %v574_v56 = vadd.f32 %v573_v35, %v528_v43 }
 0x178   :  { %v532_v62 = vpop.f32.mrf.mxu2 }
 0x179   :  { %v481_v3 = vpop.f32.mrf.mxu1 }
 0x17a   :  { %v408_v25 = vpop.f32.mrf.mxu0  ;;  %v482_v34 = vadd.f32 %v481_v3, %v401_v50 }
 0x17b   :  { %v579_v4 = vpop.f32.mrf.mxu3 }
 0x17c   :  { %v533_v5 = vadd.f32 %v532_v62, %v482_v34  ;;  %v2173_v62 = vand.u32 4294901760, %v2162_v24 }
 0x17e   :  { %v580_v33 = vadd.f32 %v579_v4, %v533_v5 }
 0x184   :  { %v537_v7 = vpop.f32.mrf.mxu2  ;;  %v2134_v32 = vpop.permute.xlu0 %341 }
 0x185   :  { %v416_v58 = vpop.f32.mrf.mxu0  ;;  %v485_v19 = vpop.f32.mrf.mxu1  ;;  %v409_v31 = vadd.f32 %v408_v25, %v2134_v32 }
 0x186   :  { %v585_v55 = vpop.f32.mrf.mxu3  ;;  %v417_v12 = vadd.f32 %v416_v58, %v2132_v15 }
 0x187   :  { %v486_v16 = vadd.f32 %v485_v19, %v409_v31 }
 0x189   :  { %v538_v39 = vadd.f32 %v537_v7, %v486_v16 }
 0x18b   :  { %v586_v41 = vadd.f32 %v585_v55, %v538_v39  ;;  %v1065_v55 = vsub.f32 %v2162_v24, %v2173_v62 }
 0x18d   :  { %v636_v8 = vpop.f32.mrf.mxu0  ;;  %v2186_v0 = vand.u32 4294901760, %v1065_v55 }
 0x18e   :  { %v489_v26 = vpop.f32.mrf.mxu1  ;;  %v542_v10 = vpop.f32.mrf.mxu2  ;;  %v637_v29 = vadd.f32 %v636_v8, %v574_v56 }
 0x18f   :  { %v490_v6 = vadd.f32 %v489_v26, %v417_v12 }
 0x191   :  { %v591_v30 = vpop.f32.mrf.mxu3  ;;  %v543_v23 = vadd.f32 %v542_v10, %v490_v6 }
 0x193   :  { %v592_v44 = vadd.f32 %v591_v30, %v543_v23 }
 0x195   :  { %v640_v59 = vpop.f32.mrf.mxu0 }
 0x196   :  { %v677_v45 = vpop.f32.mrf.mxu1  ;;  %v2136_v47 = vpop.f32.mrf.mxu2  ;;  %v641_v61 = vadd.f32 %v640_v59, %v580_v33 }
 0x197   :  { %v678_v36 = vadd.f32 %v677_v45, %v637_v29  ;;  %v723_v43 = vadd.f32 %v2136_v47, %v2144_v20 }
 0x199   :  { %v2142_v53 = vpop.f32.mrf.mxu3  ;;  %v1022_v14 = vmax.f32 %v678_v36, 0.0 }
 0x19a   :  { %v808_v47 = vadd.f32 %v2142_v53, %v723_v43 }
 0x19b   :  { %v2175_v25 = vand.u32 4294901760, %v1022_v14 }
 0x19d   :  { %v644_v2 = vpop.f32.mrf.mxu0  ;;  %v1102_v8 = vsub.f32 %v1022_v14, %v2175_v25 }
 0x19e   :  { %v681_v13 = vpop.f32.mrf.mxu1  ;;  %v2147_v46 = vpop.f32.mrf.mxu2  ;;  %v645_v1 = vadd.f32 %v644_v2, %v586_v41 }
 0x19f   :  { %v682_v22 = vadd.f32 %v681_v13, %v641_v61  ;;  %v1103_v2 = vand.u32 4294901760, %v1102_v8  ;;  %v731_v13 = vadd.f32 %v2147_v46, %v2139_v54 }
 0x1a1   :  { %v2150_v52 = vpop.f32.mrf.mxu3  ;;  %v1024_v37 = vmax.f32 %v682_v22, 0.0  ;;  %v1104_v63 = vsub.f32 %v1102_v8, %v1103_v2 }
 0x1a2   :  { %v812_v54 = vadd.f32 %v2150_v52, %v731_v13 }
 0x1a3   :  { %v2170_v49 = vand.u32 4294901760, %v1024_v37 }
 0x1a5   :  { %v648_v28 = vpop.f32.mrf.mxu0  ;;  %v1096_v58 = vsub.f32 %v1024_v37, %v2170_v49 }
 0x1a6   :  { %v685_v9 = vpop.f32.mrf.mxu1  ;;  %v2155_v60 = vpop.f32.mrf.mxu2  ;;  %v649_v21 = vadd.f32 %v648_v28, %v592_v44 }
 0x1a7   :  { %v686_v40 = vadd.f32 %v685_v9, %v645_v1  ;;  %v1097_v50 = vand.u32 4294901760, %v1096_v58  ;;  %v739_v46 = vadd.f32 %v2155_v60, %v2134_v32  ;;  %v1105_v1 = vand.u32 4294901760, %v1104_v63 }
 0x1a9   :  { %v1026_v57 = vmax.f32 %v686_v40, 0.0  ;;  %v2159_v11 = vpop.f32.mrf.mxu3  ;;  %v1098_v39 = vsub.f32 %v1096_v58, %v1097_v50 }
 0x1aa   :  { %v816_v28 = vadd.f32 %v2159_v11, %v739_v46 }
 0x1ab   :  { %v2164_v42 = vand.u32 4294901760, %v1026_v57  ;;  %v1099_v6 = vand.u32 4294901760, %v1098_v39 }
 0x1ad   :  { %v2166_v18 = vpop.f32.mrf.mxu0  ;;  %v1090_v3 = vsub.f32 %v1026_v57, %v2164_v42 }
 0x1ae   :  { %v689_v27 = vpop.f32.mrf.mxu1  ;;  %v2168_v48 = vpop.f32.mrf.mxu2  ;;  %v858_v52 = vadd.f32 %v2166_v18, %v808_v47 }
 0x1af   :  { %v690_v35 = vadd.f32 %v689_v27, %v649_v21  ;;  %v1091_v30 = vand.u32 4294901760, %v1090_v3  ;;  %v747_v23 = vadd.f32 %v2168_v48, %v2132_v15 }
 0x1b1   :  { %v1028_v4 = vmax.f32 %v690_v35, 0.0  ;;  %v2178_v7 = vpop.f32.mrf.mxu3  ;;  %v1092_v17 = vsub.f32 %v1090_v3, %v1091_v30 }
 0x1b2   :  { %v820_v44 = vadd.f32 %v2178_v7, %v747_v23 }
 0x1b3   :  { %v1054_v19 = vand.u32 4294901760, %v1028_v4  ;;  %v1093_v12 = vand.u32 4294901760, %v1092_v17 }
 0x1b5   :  { %v1084_v26 = vsub.f32 %v1028_v4, %v1054_v19  ;;  %1055 = vmatpush.msrb.mxu0 %v1054_v19  ;;  %1155 = vmatpush.msrb.mxu3 %v1054_v19  ;;  %v862_v10 = vpop.f32.mrf.mxu0 }
 0x1b6   :  { %v903_v59 = vpop.f32.mrf.mxu1  ;;  %v966_v45 = vpop.f32.mrf.mxu2  ;;  %v863_v20 = vadd.f32 %v862_v10, %v812_v54 }
 0x1b7   :  { %v1085_v31 = vand.u32 4294901760, %v1084_v26  ;;  %1057 = vmatpush.msrb.mxu0 %v2164_v42  ;;  %1126 = vmatpush.msrb.mxu2 %v1084_v26  ;;  %v904_v32 = vadd.f32 %v903_v59, %v858_v52 }
 0x1b8   :  { %1157 = vmatpush.msrb.mxu3 %v2164_v42 }
 0x1b9   :  { %v1086_v34 = vsub.f32 %v1084_v26, %v1085_v31  ;;  %1059 = vmatpush.msrb.mxu0 %v2170_v49  ;;  %1129 = vmatpush.msrb.mxu2 %v1090_v3  ;;  %v1007_v16 = vpop.f32.mrf.mxu3  ;;  %v967_v40 = vadd.f32 %v966_v45, %v904_v32 }
 0x1ba   :  { %1159 = vmatpush.msrb.mxu3 %v2170_v49 }
 0x1bb   :  { %1061 = vmatpush.msrb.mxu0 %v2175_v25  ;;  %1132 = vmatpush.msrb.mxu2 %v1096_v58  ;;  %v1087_v5 = vand.u32 4294901760, %v1086_v34  ;;  %v1008_v21 = vadd.f32 %v1007_v16, %v967_v40 }
 0x1bc   :  { %1161 = vmatpush.msrb.mxu3 %v2175_v25  ;;  %1067 = vmatmul.f32.vlgmr.msrb.gmra.mxu0 %v2186_v0 }
 0x1bd   :  { %1184 = vmatpush.msra.mxu0 %v1085_v31  ;;  %1088 = vmatpush.msrb.mxu1 %v1087_v5  ;;  %v867_v56 = vpop.f32.mrf.mxu0  ;;  %v1023_v3 = vmax.f32 %v1008_v21, 0.0 }
 0x1be   :  { %1135 = vmatpush.msrb.mxu2 %v1102_v8  ;;  %v909_v33 = vpop.f32.mrf.mxu1  ;;  %v970_v41 = vpop.f32.mrf.mxu2  ;;  %1165 = vmatmul.f32.vlgmr.msrb.gmra.mxu3 %v2173_v62  ;;  %v868_v9 = vadd.f32 %v867_v56, %v816_v28 }
 0x1bf   :  { %1188 = vmatpush.msra.mxu0 %v1091_v30  ;;  %1094 = vmatpush.msrb.mxu1 %v1093_v12  ;;  %v910_v38 = vadd.f32 %v909_v33, %v863_v20  ;;  %v1245_v7 = vand.u32 4294901760, %v1023_v3 }
 0x1c0   :  { %1138 = vmatmul.f32.vlgmr.msrb.gmra.mxu2 %v2162_v24 }
 0x1c1   :  { %1192 = vmatpush.msra.mxu0 %v1097_v50  ;;  %1100 = vmatpush.msrb.mxu1 %v1099_v6  ;;  %v1011_v61 = vpop.f32.mrf.mxu3  ;;  %v971_v29 = vadd.f32 %v970_v41, %v910_v38  ;;  %v1287_v30 = vsub.f32 %v1023_v3, %v1245_v7 }
 0x1c3   :  { %1196 = vmatpush.msra.mxu0 %v1103_v2  ;;  %1106 = vmatpush.msrb.mxu1 %v1105_v1  ;;  %v1012_v37 = vadd.f32 %v1011_v61, %v971_v29  ;;  %v1288_v17 = vand.u32 4294901760, %v1287_v30 }
 0x1c4   :  { %1108 = vmatmul.f32.vlgmr.msrb.gmra.mxu1 %v2157_v51  ;;  %1198 = vmatmul.f32.vlgmr.msra.gmra.mxu0 %v2157_v51 }
 0x1c5   :  { %1215 = vmatpush.msra.mxu1 %v1054_v19  ;;  %v872_v11 = vpop.f32.mrf.mxu0  ;;  %v1289_v39 = vsub.f32 %v1287_v30, %v1288_v17 }
 0x1c6   :  { %v915_v53 = vpop.f32.mrf.mxu1  ;;  %v974_v60 = vpop.f32.mrf.mxu2  ;;  %v873_v15 = vadd.f32 %v872_v11, %v820_v44 }
 0x1c7   :  { %v916_v22 = vadd.f32 %v915_v53, %v868_v9  ;;  %1217 = vmatpush.msra.mxu1 %v2164_v42  ;;  %v1025_v42 = vmax.f32 %v1012_v37, 0.0  ;;  %v1290_v12 = vand.u32 4294901760, %v1289_v39 }
 0x1c9   :  { %v975_v36 = vadd.f32 %v974_v60, %v916_v22  ;;  %1219 = vmatpush.msra.mxu1 %v2170_v49  ;;  %v1015_v57 = vpop.f32.mrf.mxu3  ;;  %v1243_v19 = vand.u32 4294901760, %v1025_v42 }
 0x1cb   :  { %v1016_v14 = vadd.f32 %v1015_v57, %v975_v36  ;;  %1221 = vmatpush.msra.mxu1 %v2175_v25  ;;  %v1281_v10 = vsub.f32 %v1025_v42, %v1243_v19 }
 0x1cc   :  { %1223 = vmatmul.f32.vlgmr.msra.gmra.mxu1 %v2157_v51 }
 0x1cd   :  { %v1027_v18 = vmax.f32 %v1016_v14, 0.0  ;;  %v1282_v50 = vand.u32 4294901760, %v1281_v10 }
 0x1ce   :  { %v921_v27 = vpop.f32.mrf.mxu1  ;;  %v978_v48 = vpop.f32.mrf.mxu2 }
 0x1cf   :  { %v922_v35 = vadd.f32 %v921_v27, %v873_v15  ;;  %v1241_v4 = vand.u32 4294901760, %v1027_v18  ;;  %v1283_v13 = vsub.f32 %v1281_v10, %v1282_v50 }
 0x1d1   :  { %v979_v49 = vadd.f32 %v978_v48, %v922_v35  ;;  %v1019_v58 = vpop.f32.mrf.mxu3  ;;  %v1275_v8 = vsub.f32 %v1027_v18, %v1241_v4  ;;  %v1284_v43 = vand.u32 4294901760, %v1283_v13 }
 0x1d3   :  { %v1020_v55 = vadd.f32 %v1019_v58, %v979_v49  ;;  %v1276_v45 = vand.u32 4294901760, %v1275_v8 }
 0x1d5   :  { %v1029_v26 = vmax.f32 %v1020_v55, 0.0  ;;  %v1277_v16 = vsub.f32 %v1275_v8, %v1276_v45 }
 0x1d7   :  { %v1239_v25 = vand.u32 4294901760, %v1029_v26  ;;  %v1278_v5 = vand.u32 4294901760, %v1277_v16 }
 0x1d9   :  { %v1269_v59 = vsub.f32 %v1029_v26, %v1239_v25  ;;  %1240 = vmatpush.msra.mxu2 %v1239_v25  ;;  %1340 = vmatpush.msrb.mxu1 %v1239_v25  ;;  %v1456_v26 = vlaneseq }
 0x1db   :  { %v1270_v31 = vand.u32 4294901760, %v1269_v59  ;;  %1242 = vmatpush.msra.mxu2 %v1241_v4  ;;  %1311 = vmatpush.msrb.mxu0 %v1269_v59  ;;  %vm1458_vm11 = vcmp.lt.s32.totalorder %v1456_v26, 256 }
 0x1dc   :  { %1342 = vmatpush.msrb.mxu1 %v1241_v4 }
 0x1dd   :  { %v1271_v34 = vsub.f32 %v1269_v59, %v1270_v31  ;;  %1244 = vmatpush.msra.mxu2 %v1243_v19  ;;  %1314 = vmatpush.msrb.mxu0 %v1275_v8 }
 0x1de   :  { %1344 = vmatpush.msrb.mxu1 %v1243_v19 }
 0x1df   :  { %1246 = vmatpush.msra.mxu2 %v1245_v7  ;;  %1317 = vmatpush.msrb.mxu0 %v1281_v10  ;;  %v1272_v2 = vand.u32 4294901760, %v1271_v34 }
 0x1e0   :  { %1346 = vmatpush.msrb.mxu1 %v1245_v7  ;;  %1252 = vmatmul.f32.vlgmr.msra.gmra.mxu2 %v2186_v0 }
 0x1e1   :  { %1369 = vmatpush.msrb.mxu2 %v1270_v31  ;;  %1273 = vmatpush.msra.mxu3 %v1272_v2 }
 0x1e2   :  { %1320 = vmatpush.msrb.mxu0 %v1287_v30  ;;  %1350 = vmatmul.f32.vlgmr.msrb.gmra.mxu1 %v2173_v62  ;;  %v1035_v62 = vpop.permute.xlu1 %1034 }
 0x1e3   :  { %1373 = vmatpush.msrb.mxu2 %v1276_v45  ;;  %1279 = vmatpush.msra.mxu3 %v1278_v5  ;;  %v1037_v63 = vperm.slane %v1035_v62, 0 }
 0x1e4   :  { %1323 = vmatmul.f32.vlgmr.msrb.gmra.mxu0 %v2162_v24 }
 0x1e5   :  { %1377 = vmatpush.msrb.mxu2 %v1282_v50  ;;  %1285 = vmatpush.msra.mxu3 %v1284_v43 }
 0x1e7   :  { %1381 = vmatpush.msrb.mxu2 %v1288_v17  ;;  %1291 = vmatpush.msra.mxu3 %v1290_v12 }
 0x1e8   :  { %1293 = vmatmul.f32.vlgmr.msra.gmra.mxu3 %v2157_v51  ;;  %1383 = vmatmul.f32.vlgmr.msrb.gmra.mxu2 %v2157_v51 }
 0x1e9   :  { %1400 = vmatpush.msrb.mxu3 %v1239_v25 }
 0x1eb   :  { %1402 = vmatpush.msrb.mxu3 %v1241_v4 }
 0x1ed   :  { %1404 = vmatpush.msrb.mxu3 %v1243_v19 }
 0x1ef   :  { %1406 = vmatpush.msrb.mxu3 %v1245_v7 }
 0x1f0   :  { %1408 = vmatmul.f32.vlgmr.msrb.gmra.mxu3 %v2157_v51 }
 0x239   :  { %v1068_v0 = vpop.f32.mrf.mxu0 }
 0x23a   :  { %v1069_v24 = vadd.f32 %v1068_v0, %v1037_v63 }
 0x241   :  { %v1109_v33 = vpop.f32.mrf.mxu1  ;;  %v1166_v6 = vpop.f32.mrf.mxu3 }
 0x242   :  { %v1110_v41 = vadd.f32 %v1109_v33, %v1069_v24  ;;  %v1199_v47 = vpop.f32.mrf.mxu0 }
 0x243   :  { %v1139_v54 = vpop.f32.mrf.mxu2 }
 0x244   :  { %v1140_v46 = vadd.f32 %v1139_v54, %v1110_v41 }
 0x246   :  { %v1167_v56 = vadd.f32 %v1166_v6, %v1140_v46 }
 0x248   :  { %v1200_v20 = vadd.f32 %v1199_v47, %v1167_v56 }
 0x249   :  { %v1224_v61 = vpop.f32.mrf.mxu1 }
 0x24a   :  { %v1225_v1 = vadd.f32 %v1224_v61, %v1200_v20 }
 0x24c   :  { %v1477_v28 = vmul.f32 -1.442695, %v1225_v1 }
 0x24e   :  { %1505 = vpow2.f32 %v1477_v28 }
 0x254   :  { %v1506_v29 = vpop.eup %1505 }
 0x255   :  { %v1418_v36 = vadd.f32 1.0, %v1506_v29 }
 0x257   :  { %1507 = vrcp.f32 %v1418_v36  ;;  %vm1425_vm4 = vweird.f32 %v1418_v36  ;;  %v1431_v19 = vand.u32 2147483648, %v1418_v36  ;;  %v1429_v7 = vand.u32 2147483647, %v1418_v36 }
 0x259   :  { %v1432_v59 = vor.u32 1.1754944e-38, %v1431_v19  ;;  %vm1430_vm10 = vcmp.eq.f32.partialorder %v1429_v7, 8.507059e+37 }
 0x25d   :  { %v1508_v37 = vpop.eup %1507 }
 0x25e   :  { %v1421_v15 = vmul.f32 %v1508_v37, %v1418_v36  ;;  %vm1426_vm2 = vweird.f32 %v1508_v37 }
 0x25f   :  { %v1351_v53 = vpop.f32.mrf.mxu1  ;;  %vm2220_vm5 = vmor %vm1425_vm4, %vm1426_vm2 }
 0x260   :  { %v1422_v18 = vsub.f32 1.0, %v1421_v15 }
 0x261   :  { %v1324_v51 = vpop.f32.mrf.mxu0 }
 0x262   :  { %v1423_v42 = vmul.f32 %v1508_v37, %v1422_v18 }
 0x263   :  { %v1253_v52 = vpop.f32.mrf.mxu2 }
 0x264   :  { %v1254_v38 = vadd.f32 %v1253_v52, %v1037_v63  ;;  %v1424_v4 = vadd.f32 %v1508_v37, %v1423_v42 }
 0x266   :  { %v1428_v25 = vsel %vm2220_vm5, %v1508_v37, %v1424_v4 }
 0x267   :  { %v1433_v50 = vsel %vm1430_vm10, %v1432_v59, %v1428_v25 }
 0x26b   :  { %v1294_v32 = vpop.f32.mrf.mxu3  ;;  %v1384_v23 = vpop.f32.mrf.mxu2 }
 0x26c   :  { %v1295_v9 = vadd.f32 %v1294_v32, %v1254_v38 }
 0x26e   :  { %v1325_v60 = vadd.f32 %v1324_v51, %v1295_v9 }
 0x270   :  { %v1352_v22 = vadd.f32 %v1351_v53, %v1325_v60 }
 0x272   :  { %v1385_v40 = vadd.f32 %v1384_v23, %v1352_v22 }
 0x273   :  { %v1409_v57 = vpop.f32.mrf.mxu3 }
 0x274   :  { %v1410_v11 = vadd.f32 %v1409_v57, %v1385_v40 }
 0x276   :  { %v1478_v44 = vmul.f32 -1.442695, %v1410_v11 }
 0x278   :  { %1509 = vpow2.f32 %v1478_v44 }
 0x27e   :  { %v1510_v14 = vpop.eup %1509 }
 0x27f   :  { %v1419_v21 = vadd.f32 1.0, %v1510_v14 }
 0x281   :  { %1511 = vrcp.f32 %v1419_v21  ;;  %v1446_v3 = vand.u32 2147483648, %v1419_v21  ;;  %v1444_v58 = vand.u32 2147483647, %v1419_v21  ;;  %vm1440_vm6 = vweird.f32 %v1419_v21 }
 0x283   :  { %v1447_v10 = vor.u32 1.1754944e-38, %v1446_v3  ;;  %vm1445_vm8 = vcmp.eq.f32.partialorder %v1444_v58, 8.507059e+37 }
 0x287   :  { %v1512_v27 = vpop.eup %1511 }
 0x288   :  { %v1436_v48 = vmul.f32 %v1512_v27, %v1419_v21  ;;  %vm1441_vm3 = vweird.f32 %v1512_v27 }
 0x289   :  { %vm1442_vm7 = vmor %vm1440_vm6, %vm1441_vm3 }
 0x28a   :  { %v1437_v35 = vsub.f32 1.0, %v1436_v48 }
 0x28c   :  { %v1438_v49 = vmul.f32 %v1512_v27, %v1437_v35 }
 0x28e   :  { %v1439_v8 = vadd.f32 %v1512_v27, %v1438_v49 }
 0x290   :  { %v1443_v30 = vsel %vm1442_vm7, %v1512_v27, %v1439_v8 }
 0x291   :  { %v1448_v45 = vsel %vm1445_vm8, %v1447_v10, %v1443_v30 }
 0x292   :  { %v1452_v31 = vrot.slane %v1448_v45, 7 }
 0x294   :  { %v1454_v34 = vsel %vm1453_vm9, %v1433_v50, %v1452_v31 }
 0x295   :  { %1460 = vst.msk [vmem:[#allocation3] sm:$0x3] %vm1458_vm11, %v1454_v34 }
 0x296   :  { %1471 = dma.vmem_to_hbm [thread:$0]  %s1467_s25, 32, %s1469_s1, [#allocation4]  }
 0x297   :  { %1537 = dma.done.wait [#allocation4], 32  }
 0x298   :  { %1538 = vsyncadd [#allocation4], 4294967264 }
 0x299   :  { %1476 = vsyncpa [#allocation4], 1 }

</bundles_post_ra>
